<compile_context>
chip_gen: v7x
topology: tpu7x:2x2x1
jax: 0.10.0
libtpu: 0.0.40
codegen_flags: <defaults>
</compile_context>

<pallas_src>
from functools import partial

import jax
import jax.numpy as jnp
from jax.experimental import pallas as pl
from jax.experimental.pallas import tpu as pltpu


def _build_rhs(x_ref, rhs_ref, *, offsets, c_in, q, b_blk):
    """Fill the (KH*KW*C_in, B_blk*Q) f32 VMEM scratch with statically shifted
    copies of the flat zero-padded images (shift-and-matmul im2col, VMEM only).

    RHS row order is (tap-major, channel-minor) to match the flattened weights.
    """
    for b in range(b_blk):                     # static unroll over images in the block
        for t, off in enumerate(offsets):      # static unroll over the KH*KW taps
            rhs_ref[t * c_in:(t + 1) * c_in, b * q:(b + 1) * q] = (
                x_ref[b, :, off:off + q].astype(jnp.float32))


def conv_stats_kernel(x_ref, w_ref, mask_ref, sum_ref, sq_ref, rhs_ref,
                      *, offsets, c_in, q, b_blk):
    """Conv for B_blk images as ONE fused matmul + per-channel partial batch stats.

    x_ref:    (B_blk, C_in, S_ext)   bf16  flat zero-padded images (+1 spare row)
    w_ref:    (C_out, KH*KW*C_in)    bf16  flattened weights
    mask_ref: (1, B_blk*Q)           f32   1.0 for valid columns (wo < W_out)
    sum_ref:  (1, C_out, 1)          f32   per-block per-channel sum
    sq_ref:   (1, C_out, 1)          f32   per-block per-channel sum of squares
    rhs_ref:  (KH*KW*C_in, B_blk*Q)  f32   VMEM scratch (im2col RHS)
    """
    _build_rhs(x_ref, rhs_ref, offsets=offsets, c_in=c_in, q=q, b_blk=b_blk)
    acc = jnp.dot(w_ref[...], rhs_ref[...].astype(jnp.bfloat16),
                  preferred_element_type=jnp.float32)          # (C_out, B_blk*Q) f32
    masked = acc * mask_ref[...]                               # drop pad-column garbage
    sum_ref[0] = jnp.sum(masked, axis=1, keepdims=True)
    sq_ref[0] = jnp.sum(masked * acc, axis=1, keepdims=True)


def conv_bn_lrelu_kernel(x_ref, w_ref, scale_ref, shift_ref, o_ref, rhs_ref,
                         *, offsets, c_in, q, b_blk):
    """Recompute the conv in f32 (same fused matmul), apply folded BN affine +
    LeakyReLU(0.1), write the lane-dense flat (B_blk, C_out, Q) output block.

    scale_ref/shift_ref: (C_out, 1) f32 folded BN scale/shift.
    """
    _build_rhs(x_ref, rhs_ref, offsets=offsets, c_in=c_in, q=q, b_blk=b_blk)
    acc = jnp.dot(w_ref[...], rhs_ref[...].astype(jnp.bfloat16),
                  preferred_element_type=jnp.float32)          # (C_out, B_blk*Q) f32
    z = acc * scale_ref[...] + shift_ref[...]
    z = jnp.where(z >= 0, z, jnp.float32(0.1) * z)
    for b in range(b_blk):                                     # static unroll
        o_ref[b] = z[:, b * q:(b + 1) * q]


def conv2d_block_forward(x, weight, gamma, beta, *, padding=1, eps=1e-5):
    """x: (N, C_in, H, W) f32; weight: (C_out, C_in, KH, KW); returns NCHW f32."""
    N, C_in, H, W = x.shape
    C_out, _, KH, KW = weight.shape
    H_pad, W_pad = H + 2 * padding, W + 2 * padding
    H_out, W_out = H_pad - KH + 1, W_pad - KW + 1
    Q = H_out * W_pad                       # padded-width flat output columns / image
    K_dim = KH * KW * C_in                  # fused contraction dim

    # --- cheap wrapper-side layout (no HBM im2col): pad + flatten spatial dims ---
    # one extra zero row at the bottom so every tap's flat slice of length Q is in range
    x_pad = jnp.pad(x, ((0, 0), (0, 0), (padding, padding + 1), (padding, padding)))
    S_ext = (H_pad + 1) * W_pad
    x_flat = x_pad.reshape(N, C_in, S_ext).astype(jnp.bfloat16)

    # (C_out, C_in, KH, KW) -> (C_out, KH*KW*C_in); row order (tap-major, channel-minor)
    w_flat = jnp.transpose(weight, (0, 2, 3, 1)).reshape(C_out, K_dim).astype(jnp.bfloat16)

    offsets = tuple(kh * W_pad + kw for kh in range(KH) for kw in range(KW))

    # --- images per grid step: amortize per-step overhead, keep >=2 even parallel
    # steps (v7x has 2 TCs), cap per-step VMEM blocks conservatively (v7x: 64 MiB) ---
    per_img_bytes = C_in * S_ext * 2 + K_dim * Q * 4 + C_out * Q * 4
    cap = max(1, (4 << 20) // (2 * per_img_bytes))      # x2: BlockSpec double-buffers
    b_blk = 1
    for d in range(min(N // 2, cap), 0, -1):             # largest divisor giving >=2 steps
        if N % d == 0:
            b_blk = d
            break
    n_blk = N // b_blk

    # valid-column mask (wo < W_out) for the batch statistics, tiled per image
    col = jnp.arange(Q, dtype=jnp.int32) % W_pad
    mask = jnp.tile((col < W_out).astype(jnp.float32), b_blk).reshape(1, b_blk * Q)

    rhs_scratch = pltpu.VMEM((K_dim, b_blk * Q), jnp.float32)

    # --- kernel 1: fused conv matmul -> per-block per-channel partial stats only ---
    csum, csq = pl.pallas_call(
        partial(conv_stats_kernel, offsets=offsets, c_in=C_in, q=Q, b_blk=b_blk),
        out_shape=(jax.ShapeDtypeStruct((n_blk, C_out, 1), jnp.float32),
                   jax.ShapeDtypeStruct((n_blk, C_out, 1), jnp.float32)),
        grid_spec=pltpu.PrefetchScalarGridSpec(
            num_scalar_prefetch=0,
            grid=(n_blk,),
            in_specs=[pl.BlockSpec((b_blk, C_in, S_ext), lambda n: (n, 0, 0)),
                      pl.BlockSpec((C_out, K_dim), lambda n: (0, 0)),
                      pl.BlockSpec((1, b_blk * Q), lambda n: (0, 0))],
            out_specs=[pl.BlockSpec((1, C_out, 1), lambda n: (n, 0, 0)),
                       pl.BlockSpec((1, C_out, 1), lambda n: (n, 0, 0))],
            scratch_shapes=[rhs_scratch]),
        compiler_params=pltpu.CompilerParams(dimension_semantics=("parallel",)),
    )(x_flat, w_flat, mask)

    # --- tiny per-channel glue: reduce partials, fold training-mode BN (biased var) ---
    count = jnp.float32(N * H_out * W_out)
    mean = jnp.sum(csum, axis=0) / count                              # (C_out, 1)
    var = jnp.maximum(jnp.sum(csq, axis=0) / count - mean * mean, 0.0)  # clamp >= 0
    inv = jax.lax.rsqrt(var + eps)
    g = gamma.reshape(C_out, 1).astype(jnp.float32)
    b = beta.reshape(C_out, 1).astype(jnp.float32)
    sc = g * inv
    sh = b - mean * sc

    # --- kernel 2: recompute conv (f32 acc) + BN affine + LeakyReLU, lane-dense out ---
    y = pl.pallas_call(
        partial(conv_bn_lrelu_kernel, offsets=offsets, c_in=C_in, q=Q, b_blk=b_blk),
        out_shape=jax.ShapeDtypeStruct((N, C_out, Q), jnp.float32),
        grid_spec=pltpu.PrefetchScalarGridSpec(
            num_scalar_prefetch=0,
            grid=(n_blk,),
            in_specs=[pl.BlockSpec((b_blk, C_in, S_ext), lambda n: (n, 0, 0)),
                      pl.BlockSpec((C_out, K_dim), lambda n: (0, 0)),
                      pl.BlockSpec((C_out, 1), lambda n: (0, 0)),
                      pl.BlockSpec((C_out, 1), lambda n: (0, 0))],
            out_specs=pl.BlockSpec((b_blk, C_out, Q), lambda n: (n, 0, 0)),
            scratch_shapes=[rhs_scratch]),
        compiler_params=pltpu.CompilerParams(dimension_semantics=("parallel",)),
    )(x_flat, w_flat, sc, sh)

    # free metadata reshape + cheap slice drops the 2 pad columns per output row -> NCHW
    return y.reshape(N, C_out, H_out, W_pad)[..., :W_out]


def reference_forward(x_nchw, weight, gamma, beta, *, padding=1, eps=1e-5):
    """Pure-JAX f32 reference matching PyTorch Conv2d -> BatchNorm2d(train) -> LeakyReLU(0.1)."""
    conv = jax.lax.conv_general_dilated(
        x_nchw.astype(jnp.float32), weight.astype(jnp.float32),
        window_strides=(1, 1), padding=((padding, padding), (padding, padding)),
        dimension_numbers=("NCHW", "OIHW", "NCHW"))
    mean = conv.mean(axis=(0, 2, 3), keepdims=True)
    var = conv.var(axis=(0, 2, 3), keepdims=True)   # biased, as PyTorch normalization
    g = gamma.reshape(1, -1, 1, 1)
    b = beta.reshape(1, -1, 1, 1)
    z = (conv - mean) / jnp.sqrt(var + eps) * g + b
    return jnp.where(z >= 0, z, 0.1 * z)


if __name__ == "__main__":
    key = jax.random.PRNGKey(0)
    k_x, k_w = jax.random.split(key)

    N, C_in, H, W = 2, 4, 16, 16
    C_out, KH, KW = 8, 3, 3

    x = jax.random.normal(k_x, (N, C_in, H, W), dtype=jnp.float32)
    weight = jax.random.normal(k_w, (C_out, C_in, KH, KW), dtype=jnp.float32) * 0.1
    gamma = jnp.ones((C_out,), dtype=jnp.float32)   # BatchNorm2d default init
    beta = jnp.zeros((C_out,), dtype=jnp.float32)

    fwd = jax.jit(partial(conv2d_block_forward, padding=1))
    out = jax.block_until_ready(fwd(x, weight, gamma, beta))

    ref = reference_forward(x, weight, gamma, beta, padding=1)
    assert out.shape == (N, C_out, H, W), out.shape
    # bf16 MXU operands => loosened tolerance vs the f32 reference
    max_err = float(jnp.abs(out - ref).max())
    assert max_err < 5e-2, max_err

    print("KERNEL_OK")
</pallas_src>

<mosaic_0001>
module attributes {stable_mosaic.version = 11 : i64} {
  func.func @conv_stats_kernel(%arg0: i32, %arg1: memref<1x4x342xbf16, #tpu.memory_space<vmem>>, %arg2: memref<8x36xbf16, #tpu.memory_space<vmem>>, %arg3: memref<1x288xf32, #tpu.memory_space<vmem>>, %arg4: memref<1x8x1xf32, #tpu.memory_space<vmem>>, %arg5: memref<1x8x1xf32, #tpu.memory_space<vmem>>, %arg6: memref<36x288xf32, #tpu.memory_space<vmem>>) attributes {dimension_semantics = [#tpu.dimension_semantics<parallel>], iteration_bounds = array<i64: 2>, scalar_prefetch = 0 : i64, scratch_operands = 1 : i64, tpu.core_type = #tpu.core_type<tc>, window_params = [{transform_indices = @transform_0, window_bounds = array<i64: 1, 4, 342>}, {pipeline_mode = #tpu.pipeline_mode<synchronous>, transform_indices = @transform_1, window_bounds = array<i64: 8, 36>}, {pipeline_mode = #tpu.pipeline_mode<synchronous>, transform_indices = @transform_2, window_bounds = array<i64: 1, 288>}, {transform_indices = @transform_3, window_bounds = array<i64: 1, 8, 1>}, {transform_indices = @transform_4, window_bounds = array<i64: 1, 8, 1>}]} {
    %c0 = arith.constant 0 : index
    %c0_0 = arith.constant 0 : index
    %c0_1 = arith.constant 0 : index
    %0 = vector.load %arg1[%c0, %c0_0, %c0_1] : memref<1x4x342xbf16, #tpu.memory_space<vmem>>, vector<1x4x288xbf16>
    %1 = vector.shape_cast %0 : vector<1x4x288xbf16> to vector<4x288xbf16>
    %2 = arith.extf %1 : vector<4x288xbf16> to vector<4x288xf32>
    %c0_2 = arith.constant 0 : index
    %c0_3 = arith.constant 0 : index
    %3 = vector.load %arg6[%c0_2, %c0_3] : memref<36x288xf32, #tpu.memory_space<vmem>>, vector<4x288xf32>
    tpu.vector_store %arg6[%c0_2, %c0_3], %2 {strides = array<i32>} : memref<36x288xf32, #tpu.memory_space<vmem>>, vector<4x288xf32>,
    %c0_4 = arith.constant 0 : index
    %c0_5 = arith.constant 0 : index
    %c1 = arith.constant 1 : index
    %4 = vector.load %arg1[%c0_4, %c0_5, %c1] : memref<1x4x342xbf16, #tpu.memory_space<vmem>>, vector<1x4x288xbf16>
    %5 = vector.shape_cast %4 : vector<1x4x288xbf16> to vector<4x288xbf16>
    %6 = arith.extf %5 : vector<4x288xbf16> to vector<4x288xf32>
    %c4 = arith.constant 4 : index
    %c0_6 = arith.constant 0 : index
    %7 = vector.load %arg6[%c4, %c0_6] : memref<36x288xf32, #tpu.memory_space<vmem>>, vector<4x288xf32>
    tpu.vector_store %arg6[%c4, %c0_6], %6 {strides = array<i32>} : memref<36x288xf32, #tpu.memory_space<vmem>>, vector<4x288xf32>,
    %c0_7 = arith.constant 0 : index
    %c0_8 = arith.constant 0 : index
    %c2 = arith.constant 2 : index
    %8 = vector.load %arg1[%c0_7, %c0_8, %c2] : memref<1x4x342xbf16, #tpu.memory_space<vmem>>, vector<1x4x288xbf16>
    %9 = vector.shape_cast %8 : vector<1x4x288xbf16> to vector<4x288xbf16>
    %10 = arith.extf %9 : vector<4x288xbf16> to vector<4x288xf32>
    %c8 = arith.constant 8 : index
    %c0_9 = arith.constant 0 : index
    %11 = vector.load %arg6[%c8, %c0_9] : memref<36x288xf32, #tpu.memory_space<vmem>>, vector<4x288xf32>
    tpu.vector_store %arg6[%c8, %c0_9], %10 {strides = array<i32>} : memref<36x288xf32, #tpu.memory_space<vmem>>, vector<4x288xf32>,
    %c0_10 = arith.constant 0 : index
    %c0_11 = arith.constant 0 : index
    %c18 = arith.constant 18 : index
    %12 = vector.load %arg1[%c0_10, %c0_11, %c18] : memref<1x4x342xbf16, #tpu.memory_space<vmem>>, vector<1x4x288xbf16>
    %13 = vector.shape_cast %12 : vector<1x4x288xbf16> to vector<4x288xbf16>
    %14 = arith.extf %13 : vector<4x288xbf16> to vector<4x288xf32>
    %c12 = arith.constant 12 : index
    %c0_12 = arith.constant 0 : index
    %15 = vector.load %arg6[%c12, %c0_12] : memref<36x288xf32, #tpu.memory_space<vmem>>, vector<4x288xf32>
    tpu.vector_store %arg6[%c12, %c0_12], %14 {strides = array<i32>} : memref<36x288xf32, #tpu.memory_space<vmem>>, vector<4x288xf32>,
    %c0_13 = arith.constant 0 : index
    %c0_14 = arith.constant 0 : index
    %c19 = arith.constant 19 : index
    %16 = vector.load %arg1[%c0_13, %c0_14, %c19] : memref<1x4x342xbf16, #tpu.memory_space<vmem>>, vector<1x4x288xbf16>
    %17 = vector.shape_cast %16 : vector<1x4x288xbf16> to vector<4x288xbf16>
    %18 = arith.extf %17 : vector<4x288xbf16> to vector<4x288xf32>
    %c16 = arith.constant 16 : index
    %c0_15 = arith.constant 0 : index
    %19 = vector.load %arg6[%c16, %c0_15] : memref<36x288xf32, #tpu.memory_space<vmem>>, vector<4x288xf32>
    tpu.vector_store %arg6[%c16, %c0_15], %18 {strides = array<i32>} : memref<36x288xf32, #tpu.memory_space<vmem>>, vector<4x288xf32>,
    %c0_16 = arith.constant 0 : index
    %c0_17 = arith.constant 0 : index
    %c20 = arith.constant 20 : index
    %20 = vector.load %arg1[%c0_16, %c0_17, %c20] : memref<1x4x342xbf16, #tpu.memory_space<vmem>>, vector<1x4x288xbf16>
    %21 = vector.shape_cast %20 : vector<1x4x288xbf16> to vector<4x288xbf16>
    %22 = arith.extf %21 : vector<4x288xbf16> to vector<4x288xf32>
    %c20_18 = arith.constant 20 : index
    %c0_19 = arith.constant 0 : index
    %23 = vector.load %arg6[%c20_18, %c0_19] : memref<36x288xf32, #tpu.memory_space<vmem>>, vector<4x288xf32>
    tpu.vector_store %arg6[%c20_18, %c0_19], %22 {strides = array<i32>} : memref<36x288xf32, #tpu.memory_space<vmem>>, vector<4x288xf32>,
    %c0_20 = arith.constant 0 : index
    %c0_21 = arith.constant 0 : index
    %c36 = arith.constant 36 : index
    %24 = vector.load %arg1[%c0_20, %c0_21, %c36] : memref<1x4x342xbf16, #tpu.memory_space<vmem>>, vector<1x4x288xbf16>
    %25 = vector.shape_cast %24 : vector<1x4x288xbf16> to vector<4x288xbf16>
    %26 = arith.extf %25 : vector<4x288xbf16> to vector<4x288xf32>
    %c24 = arith.constant 24 : index
    %c0_22 = arith.constant 0 : index
    %27 = vector.load %arg6[%c24, %c0_22] : memref<36x288xf32, #tpu.memory_space<vmem>>, vector<4x288xf32>
    tpu.vector_store %arg6[%c24, %c0_22], %26 {strides = array<i32>} : memref<36x288xf32, #tpu.memory_space<vmem>>, vector<4x288xf32>,
    %c0_23 = arith.constant 0 : index
    %c0_24 = arith.constant 0 : index
    %c37 = arith.constant 37 : index
    %28 = vector.load %arg1[%c0_23, %c0_24, %c37] : memref<1x4x342xbf16, #tpu.memory_space<vmem>>, vector<1x4x288xbf16>
    %29 = vector.shape_cast %28 : vector<1x4x288xbf16> to vector<4x288xbf16>
    %30 = arith.extf %29 : vector<4x288xbf16> to vector<4x288xf32>
    %c28 = arith.constant 28 : index
    %c0_25 = arith.constant 0 : index
    %31 = vector.load %arg6[%c28, %c0_25] : memref<36x288xf32, #tpu.memory_space<vmem>>, vector<4x288xf32>
    tpu.vector_store %arg6[%c28, %c0_25], %30 {strides = array<i32>} : memref<36x288xf32, #tpu.memory_space<vmem>>, vector<4x288xf32>,
    %c0_26 = arith.constant 0 : index
    %c0_27 = arith.constant 0 : index
    %c38 = arith.constant 38 : index
    %32 = vector.load %arg1[%c0_26, %c0_27, %c38] : memref<1x4x342xbf16, #tpu.memory_space<vmem>>, vector<1x4x288xbf16>
    %33 = vector.shape_cast %32 : vector<1x4x288xbf16> to vector<4x288xbf16>
    %34 = arith.extf %33 : vector<4x288xbf16> to vector<4x288xf32>
    %c32 = arith.constant 32 : index
    %c0_28 = arith.constant 0 : index
    %35 = vector.load %arg6[%c32, %c0_28] : memref<36x288xf32, #tpu.memory_space<vmem>>, vector<4x288xf32>
    tpu.vector_store %arg6[%c32, %c0_28], %34 {strides = array<i32>} : memref<36x288xf32, #tpu.memory_space<vmem>>, vector<4x288xf32>,
    %c0_29 = arith.constant 0 : index
    %c0_30 = arith.constant 0 : index
    %36 = vector.load %arg2[%c0_29, %c0_30] : memref<8x36xbf16, #tpu.memory_space<vmem>>, vector<8x36xbf16>
    %c0_31 = arith.constant 0 : index
    %c0_32 = arith.constant 0 : index
    %37 = vector.load %arg6[%c0_31, %c0_32] : memref<36x288xf32, #tpu.memory_space<vmem>>, vector<36x288xf32>
    %38 = arith.truncf %37 : vector<36x288xf32> to vector<36x288xbf16>
    %cst = arith.constant dense<0.000000e+00> : vector<8x288xf32>
    %39 = tpu.matmul %36, %38, %cst {dimension_numbers = #tpu.dot_dimension_numbers<[1], [0], [0], [1], [0, 0, 1, 1], [], []>} : vector<8x36xbf16>, vector<36x288xbf16>, vector<8x288xf32> -> vector<8x288xf32>
    %c0_33 = arith.constant 0 : index
    %c0_34 = arith.constant 0 : index
    %40 = vector.load %arg3[%c0_33, %c0_34] : memref<1x288xf32, #tpu.memory_space<vmem>>, vector<1x288xf32>
    %41 = vector.broadcast %40 : vector<1x288xf32> to vector<8x288xf32>
    %42 = arith.mulf %39, %41 : vector<8x288xf32>
    %cst_35 = arith.constant dense<0.000000e+00> : vector<8xf32>
    %43 = vector.multi_reduction <add>, %42, %cst_35 [1] : vector<8x288xf32> to vector<8xf32>
    %44 = vector.shape_cast %43 : vector<8xf32> to vector<8x1xf32>
    %c0_36 = arith.constant 0 : index
    %c0_37 = arith.constant 0 : index
    %c0_38 = arith.constant 0 : index
    %45 = vector.load %arg4[%c0_36, %c0_37, %c0_38] : memref<1x8x1xf32, #tpu.memory_space<vmem>>, vector<1x8x1xf32>
    %46 = vector.shape_cast %45 : vector<1x8x1xf32> to vector<8x1xf32>
    %47 = vector.shape_cast %44 : vector<8x1xf32> to vector<1x8x1xf32>
    tpu.vector_store %arg4[%c0_36, %c0_37, %c0_38], %47 {strides = array<i32>} : memref<1x8x1xf32, #tpu.memory_space<vmem>>, vector<1x8x1xf32>,
    %48 = arith.mulf %42, %39 : vector<8x288xf32>
    %cst_39 = arith.constant dense<0.000000e+00> : vector<8xf32>
    %49 = vector.multi_reduction <add>, %48, %cst_39 [1] : vector<8x288xf32> to vector<8xf32>
    %50 = vector.shape_cast %49 : vector<8xf32> to vector<8x1xf32>
    %c0_40 = arith.constant 0 : index
    %c0_41 = arith.constant 0 : index
    %c0_42 = arith.constant 0 : index
    %51 = vector.load %arg5[%c0_40, %c0_41, %c0_42] : memref<1x8x1xf32, #tpu.memory_space<vmem>>, vector<1x8x1xf32>
    %52 = vector.shape_cast %51 : vector<1x8x1xf32> to vector<8x1xf32>
    %53 = vector.shape_cast %50 : vector<8x1xf32> to vector<1x8x1xf32>
    tpu.vector_store %arg5[%c0_40, %c0_41, %c0_42], %53 {strides = array<i32>} : memref<1x8x1xf32, #tpu.memory_space<vmem>>, vector<1x8x1xf32>,
    return
  }
  func.func @transform_0(%arg0: i32) -> (i32, i32, i32) {
    %c0_i32 = arith.constant 0 : i32
    %c0_i32_0 = arith.constant 0 : i32
    %c0_i32_1 = arith.constant 0 : i32
    return %arg0, %c0_i32, %c0_i32_0 : i32, i32, i32
  }
  func.func @transform_1(%arg0: i32) -> (i32, i32) {
    %c0_i32 = arith.constant 0 : i32
    %c0_i32_0 = arith.constant 0 : i32
    %c0_i32_1 = arith.constant 0 : i32
    return %c0_i32, %c0_i32_0 : i32, i32
  }
  func.func @transform_2(%arg0: i32) -> (i32, i32) {
    %c0_i32 = arith.constant 0 : i32
    %c0_i32_0 = arith.constant 0 : i32
    %c0_i32_1 = arith.constant 0 : i32
    return %c0_i32, %c0_i32_0 : i32, i32
  }
  func.func @transform_3(%arg0: i32) -> (i32, i32, i32) {
    %c0_i32 = arith.constant 0 : i32
    %c0_i32_0 = arith.constant 0 : i32
    %c0_i32_1 = arith.constant 0 : i32
    return %arg0, %c0_i32, %c0_i32_0 : i32, i32, i32
  }
  func.func @transform_4(%arg0: i32) -> (i32, i32, i32) {
    %c0_i32 = arith.constant 0 : i32
    %c0_i32_0 = arith.constant 0 : i32
    %c0_i32_1 = arith.constant 0 : i32
    return %arg0, %c0_i32, %c0_i32_0 : i32, i32, i32
  }
}

module attributes {stable_mosaic.version = 11 : i64} {
  func.func @conv_bn_lrelu_kernel(%arg0: i32, %arg1: memref<1x4x342xbf16, #tpu.memory_space<vmem>>, %arg2: memref<8x36xbf16, #tpu.memory_space<vmem>>, %arg3: memref<8x1xf32, #tpu.memory_space<vmem>>, %arg4: memref<8x1xf32, #tpu.memory_space<vmem>>, %arg5: memref<1x8x288xf32, #tpu.memory_space<vmem>>, %arg6: memref<36x288xf32, #tpu.memory_space<vmem>>) attributes {dimension_semantics = [#tpu.dimension_semantics<parallel>], iteration_bounds = array<i64: 2>, scalar_prefetch = 0 : i64, scratch_operands = 1 : i64, tpu.core_type = #tpu.core_type<tc>, window_params = [{transform_indices = @transform_0, window_bounds = array<i64: 1, 4, 342>}, {pipeline_mode = #tpu.pipeline_mode<synchronous>, transform_indices = @transform_1, window_bounds = array<i64: 8, 36>}, {pipeline_mode = #tpu.pipeline_mode<synchronous>, transform_indices = @transform_2, window_bounds = array<i64: 8, 1>}, {pipeline_mode = #tpu.pipeline_mode<synchronous>, transform_indices = @transform_3, window_bounds = array<i64: 8, 1>}, {transform_indices = @transform_4, window_bounds = array<i64: 1, 8, 288>}]} {
    %c0 = arith.constant 0 : index
    %c0_0 = arith.constant 0 : index
    %c0_1 = arith.constant 0 : index
    %0 = vector.load %arg1[%c0, %c0_0, %c0_1] : memref<1x4x342xbf16, #tpu.memory_space<vmem>>, vector<1x4x288xbf16>
    %1 = vector.shape_cast %0 : vector<1x4x288xbf16> to vector<4x288xbf16>
    %2 = arith.extf %1 : vector<4x288xbf16> to vector<4x288xf32>
    %c0_2 = arith.constant 0 : index
    %c0_3 = arith.constant 0 : index
    %3 = vector.load %arg6[%c0_2, %c0_3] : memref<36x288xf32, #tpu.memory_space<vmem>>, vector<4x288xf32>
    tpu.vector_store %arg6[%c0_2, %c0_3], %2 {strides = array<i32>} : memref<36x288xf32, #tpu.memory_space<vmem>>, vector<4x288xf32>,
    %c0_4 = arith.constant 0 : index
    %c0_5 = arith.constant 0 : index
    %c1 = arith.constant 1 : index
    %4 = vector.load %arg1[%c0_4, %c0_5, %c1] : memref<1x4x342xbf16, #tpu.memory_space<vmem>>, vector<1x4x288xbf16>
    %5 = vector.shape_cast %4 : vector<1x4x288xbf16> to vector<4x288xbf16>
    %6 = arith.extf %5 : vector<4x288xbf16> to vector<4x288xf32>
    %c4 = arith.constant 4 : index
    %c0_6 = arith.constant 0 : index
    %7 = vector.load %arg6[%c4, %c0_6] : memref<36x288xf32, #tpu.memory_space<vmem>>, vector<4x288xf32>
    tpu.vector_store %arg6[%c4, %c0_6], %6 {strides = array<i32>} : memref<36x288xf32, #tpu.memory_space<vmem>>, vector<4x288xf32>,
    %c0_7 = arith.constant 0 : index
    %c0_8 = arith.constant 0 : index
    %c2 = arith.constant 2 : index
    %8 = vector.load %arg1[%c0_7, %c0_8, %c2] : memref<1x4x342xbf16, #tpu.memory_space<vmem>>, vector<1x4x288xbf16>
    %9 = vector.shape_cast %8 : vector<1x4x288xbf16> to vector<4x288xbf16>
    %10 = arith.extf %9 : vector<4x288xbf16> to vector<4x288xf32>
    %c8 = arith.constant 8 : index
    %c0_9 = arith.constant 0 : index
    %11 = vector.load %arg6[%c8, %c0_9] : memref<36x288xf32, #tpu.memory_space<vmem>>, vector<4x288xf32>
    tpu.vector_store %arg6[%c8, %c0_9], %10 {strides = array<i32>} : memref<36x288xf32, #tpu.memory_space<vmem>>, vector<4x288xf32>,
    %c0_10 = arith.constant 0 : index
    %c0_11 = arith.constant 0 : index
    %c18 = arith.constant 18 : index
    %12 = vector.load %arg1[%c0_10, %c0_11, %c18] : memref<1x4x342xbf16, #tpu.memory_space<vmem>>, vector<1x4x288xbf16>
    %13 = vector.shape_cast %12 : vector<1x4x288xbf16> to vector<4x288xbf16>
    %14 = arith.extf %13 : vector<4x288xbf16> to vector<4x288xf32>
    %c12 = arith.constant 12 : index
    %c0_12 = arith.constant 0 : index
    %15 = vector.load %arg6[%c12, %c0_12] : memref<36x288xf32, #tpu.memory_space<vmem>>, vector<4x288xf32>
    tpu.vector_store %arg6[%c12, %c0_12], %14 {strides = array<i32>} : memref<36x288xf32, #tpu.memory_space<vmem>>, vector<4x288xf32>,
    %c0_13 = arith.constant 0 : index
    %c0_14 = arith.constant 0 : index
    %c19 = arith.constant 19 : index
    %16 = vector.load %arg1[%c0_13, %c0_14, %c19] : memref<1x4x342xbf16, #tpu.memory_space<vmem>>, vector<1x4x288xbf16>
    %17 = vector.shape_cast %16 : vector<1x4x288xbf16> to vector<4x288xbf16>
    %18 = arith.extf %17 : vector<4x288xbf16> to vector<4x288xf32>
    %c16 = arith.constant 16 : index
    %c0_15 = arith.constant 0 : index
    %19 = vector.load %arg6[%c16, %c0_15] : memref<36x288xf32, #tpu.memory_space<vmem>>, vector<4x288xf32>
    tpu.vector_store %arg6[%c16, %c0_15], %18 {strides = array<i32>} : memref<36x288xf32, #tpu.memory_space<vmem>>, vector<4x288xf32>,
    %c0_16 = arith.constant 0 : index
    %c0_17 = arith.constant 0 : index
    %c20 = arith.constant 20 : index
    %20 = vector.load %arg1[%c0_16, %c0_17, %c20] : memref<1x4x342xbf16, #tpu.memory_space<vmem>>, vector<1x4x288xbf16>
    %21 = vector.shape_cast %20 : vector<1x4x288xbf16> to vector<4x288xbf16>
    %22 = arith.extf %21 : vector<4x288xbf16> to vector<4x288xf32>
    %c20_18 = arith.constant 20 : index
    %c0_19 = arith.constant 0 : index
    %23 = vector.load %arg6[%c20_18, %c0_19] : memref<36x288xf32, #tpu.memory_space<vmem>>, vector<4x288xf32>
    tpu.vector_store %arg6[%c20_18, %c0_19], %22 {strides = array<i32>} : memref<36x288xf32, #tpu.memory_space<vmem>>, vector<4x288xf32>,
    %c0_20 = arith.constant 0 : index
    %c0_21 = arith.constant 0 : index
    %c36 = arith.constant 36 : index
    %24 = vector.load %arg1[%c0_20, %c0_21, %c36] : memref<1x4x342xbf16, #tpu.memory_space<vmem>>, vector<1x4x288xbf16>
    %25 = vector.shape_cast %24 : vector<1x4x288xbf16> to vector<4x288xbf16>
    %26 = arith.extf %25 : vector<4x288xbf16> to vector<4x288xf32>
    %c24 = arith.constant 24 : index
    %c0_22 = arith.constant 0 : index
    %27 = vector.load %arg6[%c24, %c0_22] : memref<36x288xf32, #tpu.memory_space<vmem>>, vector<4x288xf32>
    tpu.vector_store %arg6[%c24, %c0_22], %26 {strides = array<i32>} : memref<36x288xf32, #tpu.memory_space<vmem>>, vector<4x288xf32>,
    %c0_23 = arith.constant 0 : index
    %c0_24 = arith.constant 0 : index
    %c37 = arith.constant 37 : index
    %28 = vector.load %arg1[%c0_23, %c0_24, %c37] : memref<1x4x342xbf16, #tpu.memory_space<vmem>>, vector<1x4x288xbf16>
    %29 = vector.shape_cast %28 : vector<1x4x288xbf16> to vector<4x288xbf16>
    %30 = arith.extf %29 : vector<4x288xbf16> to vector<4x288xf32>
    %c28 = arith.constant 28 : index
    %c0_25 = arith.constant 0 : index
    %31 = vector.load %arg6[%c28, %c0_25] : memref<36x288xf32, #tpu.memory_space<vmem>>, vector<4x288xf32>
    tpu.vector_store %arg6[%c28, %c0_25], %30 {strides = array<i32>} : memref<36x288xf32, #tpu.memory_space<vmem>>, vector<4x288xf32>,
    %c0_26 = arith.constant 0 : index
    %c0_27 = arith.constant 0 : index
    %c38 = arith.constant 38 : index
    %32 = vector.load %arg1[%c0_26, %c0_27, %c38] : memref<1x4x342xbf16, #tpu.memory_space<vmem>>, vector<1x4x288xbf16>
    %33 = vector.shape_cast %32 : vector<1x4x288xbf16> to vector<4x288xbf16>
    %34 = arith.extf %33 : vector<4x288xbf16> to vector<4x288xf32>
    %c32 = arith.constant 32 : index
    %c0_28 = arith.constant 0 : index
    %35 = vector.load %arg6[%c32, %c0_28] : memref<36x288xf32, #tpu.memory_space<vmem>>, vector<4x288xf32>
    tpu.vector_store %arg6[%c32, %c0_28], %34 {strides = array<i32>} : memref<36x288xf32, #tpu.memory_space<vmem>>, vector<4x288xf32>,
    %c0_29 = arith.constant 0 : index
    %c0_30 = arith.constant 0 : index
    %36 = vector.load %arg2[%c0_29, %c0_30] : memref<8x36xbf16, #tpu.memory_space<vmem>>, vector<8x36xbf16>
    %c0_31 = arith.constant 0 : index
    %c0_32 = arith.constant 0 : index
    %37 = vector.load %arg6[%c0_31, %c0_32] : memref<36x288xf32, #tpu.memory_space<vmem>>, vector<36x288xf32>
    %38 = arith.truncf %37 : vector<36x288xf32> to vector<36x288xbf16>
    %cst = arith.constant dense<0.000000e+00> : vector<8x288xf32>
    %39 = tpu.matmul %36, %38, %cst {dimension_numbers = #tpu.dot_dimension_numbers<[1], [0], [0], [1], [0, 0, 1, 1], [], []>} : vector<8x36xbf16>, vector<36x288xbf16>, vector<8x288xf32> -> vector<8x288xf32>
    %c0_33 = arith.constant 0 : index
    %c0_34 = arith.constant 0 : index
    %40 = vector.load %arg3[%c0_33, %c0_34] : memref<8x1xf32, #tpu.memory_space<vmem>>, vector<8x1xf32>
    %41 = vector.broadcast %40 : vector<8x1xf32> to vector<8x288xf32>
    %42 = arith.mulf %39, %41 : vector<8x288xf32>
    %c0_35 = arith.constant 0 : index
    %c0_36 = arith.constant 0 : index
    %43 = vector.load %arg4[%c0_35, %c0_36] : memref<8x1xf32, #tpu.memory_space<vmem>>, vector<8x1xf32>
    %44 = vector.broadcast %43 : vector<8x1xf32> to vector<8x288xf32>
    %45 = arith.addf %42, %44 : vector<8x288xf32>
    %cst_37 = arith.constant 0.000000e+00 : f32
    %46 = vector.broadcast %cst_37 : f32 to vector<8x288xf32>
    %47 = arith.cmpf oge, %45, %46 : vector<8x288xf32>
    %cst_38 = arith.constant 1.000000e-01 : f32
    %48 = vector.broadcast %cst_38 : f32 to vector<8x288xf32>
    %49 = arith.mulf %48, %45 : vector<8x288xf32>
    %50 = arith.select %47, %45, %49 : vector<8x288xi1>, vector<8x288xf32>
    %c0_39 = arith.constant 0 : index
    %c0_40 = arith.constant 0 : index
    %c0_41 = arith.constant 0 : index
    %51 = vector.load %arg5[%c0_39, %c0_40, %c0_41] : memref<1x8x288xf32, #tpu.memory_space<vmem>>, vector<1x8x288xf32>
    %52 = vector.shape_cast %51 : vector<1x8x288xf32> to vector<8x288xf32>
    %53 = vector.shape_cast %50 : vector<8x288xf32> to vector<1x8x288xf32>
    tpu.vector_store %arg5[%c0_39, %c0_40, %c0_41], %53 {strides = array<i32>} : memref<1x8x288xf32, #tpu.memory_space<vmem>>, vector<1x8x288xf32>,
    return
  }
  func.func @transform_0(%arg0: i32) -> (i32, i32, i32) {
    %c0_i32 = arith.constant 0 : i32
    %c0_i32_0 = arith.constant 0 : i32
    %c0_i32_1 = arith.constant 0 : i32
    return %arg0, %c0_i32, %c0_i32_0 : i32, i32, i32
  }
  func.func @transform_1(%arg0: i32) -> (i32, i32) {
    %c0_i32 = arith.constant 0 : i32
    %c0_i32_0 = arith.constant 0 : i32
    %c0_i32_1 = arith.constant 0 : i32
    return %c0_i32, %c0_i32_0 : i32, i32
  }
  func.func @transform_2(%arg0: i32) -> (i32, i32) {
    %c0_i32 = arith.constant 0 : i32
    %c0_i32_0 = arith.constant 0 : i32
    %c0_i32_1 = arith.constant 0 : i32
    return %c0_i32, %c0_i32_0 : i32, i32
  }
  func.func @transform_3(%arg0: i32) -> (i32, i32) {
    %c0_i32 = arith.constant 0 : i32
    %c0_i32_0 = arith.constant 0 : i32
    %c0_i32_1 = arith.constant 0 : i32
    return %c0_i32, %c0_i32_0 : i32, i32
  }
  func.func @transform_4(%arg0: i32) -> (i32, i32, i32) {
    %c0_i32 = arith.constant 0 : i32
    %c0_i32_0 = arith.constant 0 : i32
    %c0_i32_1 = arith.constant 0 : i32
    return %arg0, %c0_i32, %c0_i32_0 : i32, i32, i32
  }
}

</mosaic_0001>

<bundles_post_ra>
// kernel: conv2d_block_forward.3
= control target key start
LH: loop header
LB: loop body
LE: loop exit
PB: predicated region body
PF: predicated region fallthrough
CT: control target
= control target key end

     0   :  { %s721_s15 = smov 0   ;;  %s787_s0 = inlined_call_operand.vmem [shape: bf16[2,4,342], index: 0, kind: input, shape index: {}]   ;;  %s788_s1 = inlined_call_operand.vmem [shape: bf16[8,36], index: 1, kind: input, shape index: {}]   ;;  %s789_s2 = inlined_call_operand.vmem [shape: f32[8,1], index: 2, kind: input, shape index: {}]   ;;  %s790_s3 = inlined_call_operand.vmem [shape: f32[8,1], index: 3, kind: input, shape index: {}]   ;;  %s791_s4 = inlined_call_operand.vmem [shape: f32[2,8,288], index: 4, kind: output, shape index: {}]  }
   0x1 LB: > { %s588_s16 = sadd.s32 4294967295, %s683_s15   ;;  %p592_p0 = scmp.ge.s32.totalorder %s683_s15, 1  ;;  %s683_s15 = sphi %s721_s15, %s14_s15  }
   0x2   : > { %p162_p1 = scmp.lt.s32.totalorder %s683_s15, 3 }
   0x4   : > { %p163_p2 = pnand %p592_p0, %p162_p1 }
   0x5   : > { %p188_p3 = scmp.lt.s32.totalorder (!%p163_p2), %s588_s16, 1  ;;  %s685_s21 = smov (!%p163_p2), 126   ;;  %vm207_vm0 = vcmask (!%p163_p2), 257024   ;;  %v688_v29 = vmov (!%p163_p2), 0.0   ;;  %vm694_vm1 = vmmov (!%p163_p2), 0   ;;  %v695_v49 = vmov (!%p163_p2), 0  }
   0x6   : > { %166 = sbr.rel (%p163_p2) target bundleno = 404 (0x194), region = 36  ;;  %s686_s22 = smov (!%p163_p2), 110   ;;  %604 = vmatprep.subr.bf16.mxu1 (!%p163_p2), %v688_v29  ;;  %610 = vmatprep.mubr.msk.bf16.mxu1 (!%p163_p2), %vm694_vm1, %v688_v29  ;;  %v502_v50 = vld [vmem:[%s789_s2] sm:$0xff] (!%p163_p2)  ;;  %vm230_vm2 = vcmask (!%p163_p2), 261124   ;;  %vm266_vm3 = vcmask (!%p163_p2), 900096   ;;  %vm222_vm4 = vcmask (!%p163_p2), 1039360  }
   0x7   : > { %s687_s23 = smov (!%p163_p2), 127   ;;  %s689_s24 = smov (!%p163_p2), 109   ;;  %453 = vmatprep.mubr.bf16.mxu0 (!%p163_p2), %v695_v49  ;;  %675 = vset.pattern.permute.xlu0 (!%p163_p2), %v695_v49  ;;  %v511_v51 = vld [vmem:[%s790_s3] sm:$0xff] (!%p163_p2)  ;;  %vm244_vm5 = vcmask (!%p163_p2), 1031168   ;;  %vm287_vm6 = vcmask (!%p163_p2), 891904   ;;  %vm309_vm7 = vcmask (!%p163_p2), 883712  }
   0x8   : > { %s690_s25 = smov (!%p163_p2), 108   ;;  %s691_s26 = smov (!%p163_p2), 92   ;;  %676 = vset.pattern.permute.xlu1 (!%p163_p2), %v695_v49  ;;  %vm330_vm8 = vcmask (!%p163_p2), 752640   ;;  %vm352_vm9 = vcmask (!%p163_p2), 744448   ;;  %vm373_vm10 = vcmask (!%p163_p2), 736256   ;;  %vm411_vm11 = vcmask (!%p163_p2), 1041408  }
   0x9   : > { %s692_s27 = smov (!%p163_p2), 91   ;;  %s693_s28 = smov (!%p163_p2), 90   ;;  %vm407_vm12 = vcmask (!%p163_p2), 293888   ;;  %vm531_vm13 = vcmask (!%p163_p2), 261120  }
   0xd   : > { %s793_s16 = smov (!%p188_p3, %s588_s16), 1 }
   0xe   : > { %s614_s17 = smul.u32 6, %s793_s16 }
   0xf   : > { %s615_s9 = smul.u32 24, %s793_s16 }
  0x10   : > { %s735_s20 = scalar_lea.vmem %s787_s0, %s614_s17 }
  0x11   : > { %v232_v0 = vld [vmem:[%s735_s20] sm:$0x3f]  ;;  %s197_s12 = scalar_lea.vmem %s791_s4, %s615_s9 }
  0x12   : > { %v253_v1 = vld [vmem:[%s735_s20] sm:$0x3f]  ;;  %v233_v3 = vunpack.c.l.bf16 %v232_v0  ;;  %v234_v10 = vunpack.c.h.bf16 %v232_v0 }
  0x13   : > { %v209_v2 = vld [vmem:[%s735_s20] sm:$0x3f]  ;;  %v254_v4 = vunpack.c.l.bf16 %v253_v1  ;;  %v255_v5 = vunpack.c.h.bf16 %v253_v1 }
  0x14   : > { %v275_v6 = vld [vmem:[%s735_s20] sm:$0x3f]  ;;  %v210_v7 = vunpack.c.l.bf16 %v209_v2  ;;  %v211_v8 = vunpack.c.h.bf16 %v209_v2  ;;  %238 = vrot.lane.b32.xlu0 %v233_v3, %s685_s21  ;;  %v237_v11 = vcombine.high %v233_v3, %v233_v3 }
  0x15   : > { %v259_v9 = vcombine.low %v255_v5, %v255_v5  ;;  %v276_v13 = vunpack.c.l.bf16 %v275_v6  ;;  %v296_v14 = vld [vmem:[%s735_s20] sm:$0x3f]  ;;  %v277_v20 = vunpack.c.h.bf16 %v275_v6  ;;  %v258_v30 = vcombine.low %v254_v4, %v254_v4 }
  0x16   : > { %v215_v12 = vcombine.low %v211_v8, %v211_v8  ;;  %v318_v16 = vld [vmem:[%s735_s20] sm:$0x3f]  ;;  %v214_v19 = vcombine.low %v210_v7, %v210_v7  ;;  %v298_v21 = vunpack.c.h.bf16 %v296_v14  ;;  %v640_v22 = vpack.i.bf16 %v234_v10, %v237_v11 }
  0x17   : > { %v645_v15 = vpack.i.bf16 %v259_v9, %v254_v4  ;;  %v199_v17 = vld [vmem:[%s735_s20] sm:$0x3f]  ;;  %v280_v23 = vcombine.high %v276_v13, %v276_v13  ;;  %v319_v24 = vunpack.c.l.bf16 %v318_v16  ;;  %v297_v31 = vunpack.c.l.bf16 %v296_v14 }
  0x18   : > { %v635_v18 = vpack.i.bf16 %v215_v12, %v210_v7  ;;  %v339_v25 = vld [vmem:[%s735_s20] sm:$0x3f]  ;;  %v200_v26 = vunpack.c.l.bf16 %v199_v17  ;;  %v201_v27 = vunpack.c.h.bf16 %v199_v17  ;;  %v302_v32 = vcombine.low %v298_v21, %v298_v21 }
  0x19   : > { %646 = vrot.lane.b32.xlu1 %v645_v15, %s686_s22  ;;  %v341_v33 = vunpack.c.h.bf16 %v339_v25  ;;  %v650_v34 = vpack.i.bf16 %v277_v20, %v280_v23  ;;  %v320_v35 = vunpack.c.h.bf16 %v318_v16  ;;  %v323_v36 = vcombine.high %v319_v24, %v319_v24  ;;  %v361_v41 = vld [vmem:[%s735_s20] sm:$0x3f] }
  0x1a   : > { %636 = vrot.lane.b32.xlu0 %v635_v18, %s687_s23  ;;  %v203_v28 = vcombine.high %v200_v26, %v200_v26  ;;  %205 = vst [vmem:[#allocation2] sm:$0xf] %v200_v26  ;;  %208 = vst.msk [vmem:[#allocation2 + $0x10] sm:$0xf] %vm207_vm0, %v201_v27  ;;  %v655_v37 = vpack.i.bf16 %v302_v32, %v297_v31  ;;  %v340_v38 = vunpack.c.l.bf16 %v339_v25  ;;  %v362_v43 = vunpack.c.l.bf16 %v361_v41 }
  0x1b   : > { %v345_v39 = vcombine.low %v341_v33, %v341_v33  ;;  %v660_v40 = vpack.i.bf16 %v320_v35, %v323_v36  ;;  %v301_v44 = vcombine.low %v297_v31, %v297_v31  ;;  %v363_v48 = vunpack.c.h.bf16 %v361_v41 }
  0x1c   : > { %206 = vst [vmem:[#allocation2 + $0x8] sm:$0xf] %v203_v28  ;;  %v366_v45 = vcombine.high %v362_v43, %v362_v43  ;;  %v344_v46 = vcombine.low %v340_v38, %v340_v38 }
  0x1d   : > { %216 = vrot.lane.b32.xlu1 %v214_v19, %s687_s23  ;;  %v665_v42 = vpack.i.bf16 %v345_v39, %v340_v38 }
  0x1e   : > { %641 = vrot.lane.b32.xlu0 %v640_v22, %s685_s21  ;;  %v670_v47 = vpack.i.bf16 %v366_v45, %v362_v43 }
  0x21   : > { %260 = vrot.lane.b32.xlu1 %v258_v30, %s686_s22 }
  0x22   : > { %651 = vrot.lane.b32.xlu0 %v650_v34, %s689_s24 }
  0x25   : > { %656 = vrot.lane.b32.xlu1 %v655_v37, %s690_s25 }
  0x26   : > { %661 = vrot.lane.b32.xlu0 %v660_v40, %s691_s26 }
  0x29   : > { %666 = vrot.lane.b32.xlu1 %v665_v42, %s692_s27 }
  0x2a   : > { %281 = vrot.lane.b32.xlu0 %v276_v13, %s689_s24 }
  0x2d   : > { %303 = vrot.lane.b32.xlu1 %v301_v44, %s690_s25 }
  0x2e   : > { %324 = vrot.lane.b32.xlu0 %v319_v24, %s691_s26 }
  0x31   : > { %346 = vrot.lane.b32.xlu1 %v344_v46, %s692_s27 }
  0x32   : > { %671 = vrot.lane.b32.xlu0 %v670_v47, %s693_s28 }
  0x35   : > { %371 = vrot.lane.b32.xlu1 %v363_v48, %s693_s28 }
  0x36   : > { %505 = vperm.xlu0 %675, %v502_v50  }
  0x39   : > { %514 = vperm.xlu1 %676, %v511_v51  }
  0x86   : > { %v239_v52 = vpop.permute.xlu0 %238 }
  0x8b   : > { %v647_v53 = vpop.permute.xlu1 %646 }
  0x8c   : > { %v649_v54 = vunpack.i.h.bf16 %v647_v53  ;;  %v648_v55 = vunpack.i.l.bf16 %v647_v53  ;;  %v637_v56 = vpop.permute.xlu0 %636 }
  0x8d   : > { %v639_v57 = vunpack.i.h.bf16 %v637_v56  ;;  %v638_v58 = vunpack.i.l.bf16 %v637_v56 }
  0x8e   : > { %274 = vst.msk [vmem:[#allocation2 + $0x28] sm:$0xf0] %vm230_vm2, %v649_v54  ;;  %v268_v59 = vsel %vm266_vm3, %v648_v55, %v649_v54 }
  0x8f   : > { %231 = vst.msk [vmem:[#allocation2 + $0x10] sm:$0xf0] %vm230_vm2, %v639_v57  ;;  %v224_v60 = vsel %vm222_vm4, %v638_v58, %v639_v57  ;;  %v217_v61 = vpop.permute.xlu1 %216  ;;  %273 = vst [vmem:[#allocation2 + $0x20] sm:$0xf0] %v268_v59 }
  0x90   : > { %v642_v62 = vpop.permute.xlu0 %641  ;;  %229 = vst [vmem:[#allocation2 + $0x8] sm:$0xf0] %v224_v60  ;;  %v223_v63 = vsel %vm222_vm4, %v217_v61, %v638_v58 }
  0x91   : > { %v644_v0 = vunpack.i.h.bf16 %v642_v62  ;;  %v643_v1 = vunpack.i.l.bf16 %v642_v62  ;;  %228 = vst [vmem:[#allocation2] sm:$0xf0] %v223_v63 }
  0x93   : > { %252 = vst.msk [vmem:[#allocation2 + $0x28] sm:$0xf] %vm207_vm0, %v644_v0  ;;  %v245_v2 = vsel %vm244_vm5, %v239_v52, %v643_v1  ;;  %v246_v3 = vsel %vm244_vm5, %v643_v1, %v644_v0  ;;  %v261_v4 = vpop.permute.xlu1 %260 }
  0x94   : > { %250 = vst [vmem:[#allocation2 + $0x18] sm:$0xf] %v245_v2  ;;  %251 = vst [vmem:[#allocation2 + $0x20] sm:$0xf] %v246_v3  ;;  %v652_v5 = vpop.permute.xlu0 %651  ;;  %v267_v6 = vsel %vm266_vm3, %v261_v4, %v648_v55 }
  0x95   : > { %v654_v7 = vunpack.i.h.bf16 %v652_v5  ;;  %v653_v8 = vunpack.i.l.bf16 %v652_v5  ;;  %272 = vst [vmem:[#allocation2 + $0x18] sm:$0xf0] %v267_v6 }
  0x96   : > { %v385_v16 = vld [vmem:[#allocation2 + $0x10] sm:$0xff] }
  0x97   : > { %295 = vst.msk [vmem:[#allocation2 + $0x40] sm:$0xf] %vm207_vm0, %v654_v7  ;;  %v657_v9 = vpop.permute.xlu1 %656  ;;  %v289_v10 = vsel %vm287_vm6, %v653_v8, %v654_v7  ;;  %v384_v21 = vld [vmem:[#allocation2 + $0x8] sm:$0xff] }
  0x98   : > { %v662_v11 = vpop.permute.xlu0 %661  ;;  %v659_v12 = vunpack.i.h.bf16 %v657_v9  ;;  %v658_v13 = vunpack.i.l.bf16 %v657_v9  ;;  %294 = vst [vmem:[#allocation2 + $0x38] sm:$0xf] %v289_v10  ;;  %v383_v28 = vld [vmem:[#allocation2] sm:$0xff] }
  0x99   : > { %v664_v14 = vunpack.i.h.bf16 %v662_v11  ;;  %v663_v15 = vunpack.i.l.bf16 %v662_v11 }
  0x9a   : > { %317 = vst.msk [vmem:[#allocation2 + $0x40] sm:$0xf0] %vm230_vm2, %v659_v12  ;;  %v388_v17 = vld [vmem:[#allocation2 + $0x28] sm:$0xff]  ;;  %v311_v18 = vsel %vm309_vm7, %v658_v13, %v659_v12 }
  0x9b   : > { %338 = vst.msk [vmem:[#allocation2 + $0x58] sm:$0xf] %vm207_vm0, %v664_v14  ;;  %v667_v19 = vpop.permute.xlu1 %666  ;;  %v400_v20 = vpack.c.bf16 %v388_v17, %v385_v16  ;;  %v387_v22 = vld [vmem:[#allocation2 + $0x20] sm:$0xff]  ;;  %v332_v23 = vsel %vm330_vm8, %v663_v15, %v664_v14  ;;  %316 = vst [vmem:[#allocation2 + $0x38] sm:$0xf0] %v311_v18 }
  0x9c   : > { %v282_v24 = vpop.permute.xlu0 %281  ;;  %v669_v25 = vunpack.i.h.bf16 %v667_v19  ;;  %v668_v26 = vunpack.i.l.bf16 %v667_v19  ;;  %v399_v27 = vpack.c.bf16 %v387_v22, %v384_v21  ;;  %337 = vst [vmem:[#allocation2 + $0x50] sm:$0xf] %v332_v23  ;;  %v386_v30 = vld [vmem:[#allocation2 + $0x18] sm:$0xff] }
  0x9d   : > { %v288_v31 = vsel %vm287_vm6, %v282_v24, %v653_v8  ;;  %605 = vmatpush3.bf16.msra.mxu1 %v400_v20  ;;  %v398_v32 = vpack.c.bf16 %v386_v30, %v383_v28 }
  0x9e   : > { %293 = vst [vmem:[#allocation2 + $0x30] sm:$0xf] %v288_v31  ;;  %360 = vst.msk [vmem:[#allocation2 + $0x58] sm:$0xf0] %vm230_vm2, %v669_v25  ;;  %421 = vmatprep.subr.bf16.mxu0 %v399_v27  ;;  %v354_v33 = vsel %vm352_vm9, %v668_v26, %v669_v25  ;;  %606 = vmatprep.subr.bf16.mxu1 %v688_v29 }
  0x9f   : > { %v304_v34 = vpop.permute.xlu1 %303  ;;  %422 = vmatpush1.bf16.msra.mxu0 %v398_v32  ;;  %359 = vst [vmem:[#allocation2 + $0x50] sm:$0xf0] %v354_v33 }
  0xa0   : > { %v325_v35 = vpop.permute.xlu0 %324  ;;  %v310_v36 = vsel %vm309_vm7, %v304_v34, %v658_v13 }
  0xa1   : > { %v331_v37 = vsel %vm330_vm8, %v325_v35, %v663_v15  ;;  %315 = vst [vmem:[#allocation2 + $0x30] sm:$0xf0] %v310_v36  ;;  %v391_v43 = vld [vmem:[#allocation2 + $0x40] sm:$0xff] }
  0xa2   : > { %336 = vst [vmem:[#allocation2 + $0x48] sm:$0xf] %v331_v37  ;;  %v390_v46 = vld [vmem:[#allocation2 + $0x38] sm:$0xff] }
  0xa3   : > { %v347_v38 = vpop.permute.xlu1 %346 }
  0xa4   : > { %v353_v39 = vsel %vm352_vm9, %v347_v38, %v668_v26  ;;  %v672_v40 = vpop.permute.xlu0 %671 }
  0xa5   : > { %358 = vst [vmem:[#allocation2 + $0x48] sm:$0xf0] %v353_v39  ;;  %v674_v41 = vunpack.i.h.bf16 %v672_v40  ;;  %v673_v42 = vunpack.i.l.bf16 %v672_v40  ;;  %v394_v44 = vld [vmem:[#allocation2 + $0x58] sm:$0xff] }
  0xa6   : > { %v403_v45 = vpack.c.bf16 %v394_v44, %v391_v43  ;;  %v393_v47 = vld [vmem:[#allocation2 + $0x50] sm:$0xff] }
  0xa7   : > { %v374_v48 = vsel %vm373_vm10, %v673_v42, %v674_v41  ;;  %v372_v49 = vpop.permute.xlu1 %371  ;;  %v402_v50 = vpack.c.bf16 %v393_v47, %v390_v46 }
  0xa8   : > { %379 = vst [vmem:[#allocation2 + $0x60] sm:$0xf] %v374_v48  ;;  %v375_v51 = vsel %vm373_vm10, %v674_v41, %v372_v49  ;;  %381 = vst.msk [vmem:[#allocation2 + $0x70] sm:$0xf] %vm207_vm0, %v372_v49  ;;  %607 = vmatpush3.bf16.msra.mxu1 %v403_v45  ;;  %v389_v52 = vld [vmem:[#allocation2 + $0x30] sm:$0xff] }
  0xa9   : > { %380 = vst [vmem:[#allocation2 + $0x68] sm:$0xf] %v375_v51  ;;  %423 = vmatprep.subr.bf16.mxu0 %v402_v50  ;;  %608 = vmatprep.subr.bf16.mxu1 %v688_v29  ;;  %v382_v29 = vld [vmem:[%s788_s1] sm:$0xf] }
  0xac   : > { %v392_v53 = vld [vmem:[#allocation2 + $0x48] sm:$0xff] }
  0xad   : > { %v401_v54 = vpack.c.bf16 %v392_v53, %v389_v52 }
  0xaf   : > { %424 = vmatpush1.bf16.msra.mxu0 %v401_v54  ;;  %v397_v55 = vld [vmem:[#allocation2 + $0x70] sm:$0xf]  ;;  %v395_v56 = vld [vmem:[#allocation2 + $0x60] sm:$0xf] }
  0xb0   : > { %v396_v57 = vld [vmem:[#allocation2 + $0x68] sm:$0xf]  ;;  %v406_v58 = vpack.c.bf16 %v397_v55, %v397_v55  ;;  %v404_v59 = vpack.c.bf16 %v395_v56, %v395_v56 }
  0xb1   : > { %v405_v60 = vpack.c.bf16 %v396_v57, %v396_v57 }
  0xb2   : > { %v419_v61 = vsel %vm411_vm11, %v406_v58, 0  ;;  %v413_v62 = vsel %vm411_vm11, %v404_v59, 0 }
  0xb3   : > { %595 = vmatprep.subr.msk.bf16.mxu0 %vm411_vm11, %v405_v60  ;;  %609 = vmatpush3.bf16.msra.mxu1 %v419_v61 }
  0xb4   : > { %426 = vmatpush1.bf16.msra.mxu0 %v413_v62 }
  0xb5   : > { %v506_v63 = vpop.permute.xlu0 %505 }
  0xb6   : > { %611 = vmatmul.mubr.msk.bf16.vlgmr.msra.gmra.mrb[0].mxu1 %vm407_vm12, %v382_v29 }
  0xb7   : > { %596 = vmatmul.mubr.msk.bf16.vlgmr.msra.gmra.mrb[0].mxu0 %vm407_vm12, %v382_v29 }
  0xb8   : > { %v515_v1 = vpop.permute.xlu1 %514 }
 0x189   : > { %v496_v0 = vpop.f32.mrb[0].mxu1 }
 0x18a   : > { %v510_v2 = vmul.f32 %v506_v63, %v496_v0  ;;  %v455_v3 = vpop.f32.mrb[0].mxu0  ;;  %v612_v4 = vpop.f32.mrb[1].mxu1 }
 0x18b   : > { %v508_v5 = vmul.f32 %v506_v63, %v455_v3  ;;  %v457_v6 = vpop.f32.mrb[1].mxu0  ;;  %v499_v7 = vpop.f32.mrb[2].mxu1 }
 0x18c   : > { %v519_v8 = vadd.f32 %v515_v1, %v510_v2  ;;  %v509_v9 = vmul.f32 %v506_v63, %v457_v6  ;;  %v459_v10 = vpop.f32.mrb[2].mxu0  ;;  %v613_v11 = vpop.f32.mrb[3].mxu1 }
 0x18d   : > { %v517_v12 = vadd.f32 %v515_v1, %v508_v5  ;;  %v460_v13 = vpop.f32.mrb[3].mxu0 }
 0x18e   : > { %vm522_vm14 = vcmp.ge.f32.partialorder %v519_v8, 0.0  ;;  %v525_v14 = vmul.f32 0.1, %v519_v8  ;;  %v518_v15 = vadd.f32 %v515_v1, %v509_v9 }
 0x18f   : > { %vm520_vm15 = vcmp.ge.f32.partialorder %v517_v12, 0.0  ;;  %v523_v16 = vmul.f32 0.1, %v517_v12 }
 0x190   : > { %v528_v17 = vsel %vm522_vm14, %v519_v8, %v525_v14  ;;  %vm521_vm0 = vcmp.ge.f32.partialorder %v518_v15, 0.0  ;;  %v524_v18 = vmul.f32 0.1, %v518_v15 }
 0x191   : > { %v526_v19 = vsel %vm520_vm15, %v517_v12, %v523_v16  ;;  %532 = vst.msk [vmem:[%s197_s12 + $0x10] sm:$0xff] %vm531_vm13, %v528_v17 }
 0x192   : > { %529 = vst [vmem:[%s197_s12] sm:$0xff] %v526_v19  ;;  %v527_v20 = vsel %vm521_vm0, %v518_v15, %v524_v18 }
 0x193   : > { %530 = vst [vmem:[%s197_s12 + $0x8] sm:$0xff] %v527_v20 }
 0x194 PF: > { %s14_s15 = sadd.s32 1, %s683_s15  }
 0x195   : > { %p11_p4 = scmp.ge.s32.totalorder %s14_s15, 4  }
 0x197   :  { %13 = sbr.rel (!%p11_p4) target bundleno = 1 (0x1), region = 66 }

// kernel: conv2d_block_forward.2
= control target key start
LH: loop header
LB: loop body
LE: loop exit
PB: predicated region body
PF: predicated region fallthrough
CT: control target
= control target key end

     0   :  { %s763_s15 = smov 0   ;;  %s829_s0 = inlined_call_operand.vmem [shape: bf16[2,4,342], index: 0, kind: input, shape index: {}]   ;;  %s830_s1 = inlined_call_operand.vmem [shape: bf16[8,36], index: 1, kind: input, shape index: {}]   ;;  %s831_s2 = inlined_call_operand.vmem [shape: f32[1,288], index: 2, kind: input, shape index: {}]   ;;  %s832_s3 = inlined_call_operand.vmem [shape: f32[2,8,1], index: 3, kind: output, shape index: {0}]   ;;  %s833_s4 = inlined_call_operand.vmem [shape: f32[2,8,1], index: 4, kind: output, shape index: {1}]  }
   0x1 LB: > { %s632_s16 = sadd.s32 4294967295, %s725_s15   ;;  %p636_p0 = scmp.ge.s32.totalorder %s725_s15, 1  ;;  %s725_s15 = sphi %s763_s15, %s15_s15  }
   0x2   : > { %p165_p1 = scmp.lt.s32.totalorder %s725_s15, 3 }
   0x4   : > { %p166_p2 = pnand %p636_p0, %p165_p1 }
   0x5   : > { %p194_p3 = scmp.lt.s32.totalorder (!%p166_p2), %s632_s16, 1  ;;  %s727_s21 = smov (!%p166_p2), 126   ;;  %vm216_vm0 = vcmask (!%p166_p2), 257024   ;;  %v730_v29 = vmov (!%p166_p2), 0.0   ;;  %vm736_vm1 = vmmov (!%p166_p2), 0   ;;  %v737_v49 = vmov (!%p166_p2), 0  }
   0x6   : > { %169 = sbr.rel (%p166_p2) target bundleno = 547 (0x223), region = 32  ;;  %s728_s22 = smov (!%p166_p2), 110   ;;  %649 = vmatprep.subr.bf16.mxu1 (!%p166_p2), %v730_v29  ;;  %655 = vmatprep.mubr.msk.bf16.mxu1 (!%p166_p2), %vm736_vm1, %v730_v29  ;;  %vm239_vm2 = vcmask (!%p166_p2), 261124   ;;  %vm275_vm3 = vcmask (!%p166_p2), 900096   ;;  %vm231_vm4 = vcmask (!%p166_p2), 1039360   ;;  %vm253_vm5 = vcmask (!%p166_p2), 1031168  }
   0x7   : > { %s729_s23 = smov (!%p166_p2), 127   ;;  %s731_s24 = smov (!%p166_p2), 109   ;;  %462 = vmatprep.mubr.bf16.mxu0 (!%p166_p2), %v737_v49  ;;  %vm296_vm6 = vcmask (!%p166_p2), 891904   ;;  %vm318_vm7 = vcmask (!%p166_p2), 883712   ;;  %vm339_vm8 = vcmask (!%p166_p2), 752640   ;;  %vm361_vm9 = vcmask (!%p166_p2), 744448  }
   0x8   : > { %s732_s25 = smov (!%p166_p2), 108   ;;  %s733_s26 = smov (!%p166_p2), 92   ;;  %vm382_vm10 = vcmask (!%p166_p2), 736256   ;;  %vm420_vm11 = vcmask (!%p166_p2), 1041408   ;;  %vm416_vm12 = vcmask (!%p166_p2), 293888   ;;  %vm532_vm13 = vcmask (!%p166_p2), 261120  }
   0x9   : > { %s734_s27 = smov (!%p166_p2), 91   ;;  %s735_s28 = smov (!%p166_p2), 90   ;;  %vm537_vm14 = vcmask (!%p166_p2), 7168  }
   0xd   : > { %s835_s16 = smov (!%p194_p3, %s632_s16), 1 }
   0xe   : > { %s659_s17 = smul.u32 6, %s835_s16  ;;  %s638_s7 = sshll.u32 %s835_s16, 3 }
   0xf   : > { %s202_s10 = scalar_lea.vmem %s832_s3, %s638_s7  ;;  %s206_s13 = scalar_lea.vmem %s833_s4, %s638_s7 }
  0x10   : > { %s777_s20 = scalar_lea.vmem %s829_s0, %s659_s17 }
  0x11   : > { %v241_v0 = vld [vmem:[%s777_s20] sm:$0x3f] }
  0x12   : > { %v262_v1 = vld [vmem:[%s777_s20] sm:$0x3f]  ;;  %v242_v3 = vunpack.c.l.bf16 %v241_v0  ;;  %v243_v10 = vunpack.c.h.bf16 %v241_v0 }
  0x13   : > { %v218_v2 = vld [vmem:[%s777_s20] sm:$0x3f]  ;;  %v263_v4 = vunpack.c.l.bf16 %v262_v1  ;;  %v264_v5 = vunpack.c.h.bf16 %v262_v1 }
  0x14   : > { %v284_v6 = vld [vmem:[%s777_s20] sm:$0x3f]  ;;  %v219_v7 = vunpack.c.l.bf16 %v218_v2  ;;  %v220_v8 = vunpack.c.h.bf16 %v218_v2  ;;  %247 = vrot.lane.b32.xlu0 %v242_v3, %s727_s21  ;;  %v246_v11 = vcombine.high %v242_v3, %v242_v3 }
  0x15   : > { %v268_v9 = vcombine.low %v264_v5, %v264_v5  ;;  %v285_v13 = vunpack.c.l.bf16 %v284_v6  ;;  %v305_v14 = vld [vmem:[%s777_s20] sm:$0x3f]  ;;  %v286_v20 = vunpack.c.h.bf16 %v284_v6  ;;  %v267_v30 = vcombine.low %v263_v4, %v263_v4 }
  0x16   : > { %v224_v12 = vcombine.low %v220_v8, %v220_v8  ;;  %v327_v16 = vld [vmem:[%s777_s20] sm:$0x3f]  ;;  %v223_v19 = vcombine.low %v219_v7, %v219_v7  ;;  %v307_v21 = vunpack.c.h.bf16 %v305_v14  ;;  %v684_v22 = vpack.i.bf16 %v243_v10, %v246_v11 }
  0x17   : > { %v689_v15 = vpack.i.bf16 %v268_v9, %v263_v4  ;;  %v208_v17 = vld [vmem:[%s777_s20] sm:$0x3f]  ;;  %v289_v23 = vcombine.high %v285_v13, %v285_v13  ;;  %v328_v24 = vunpack.c.l.bf16 %v327_v16  ;;  %v306_v31 = vunpack.c.l.bf16 %v305_v14 }
  0x18   : > { %v679_v18 = vpack.i.bf16 %v224_v12, %v219_v7  ;;  %v348_v25 = vld [vmem:[%s777_s20] sm:$0x3f]  ;;  %v209_v26 = vunpack.c.l.bf16 %v208_v17  ;;  %v210_v27 = vunpack.c.h.bf16 %v208_v17  ;;  %v311_v32 = vcombine.low %v307_v21, %v307_v21 }
  0x19   : > { %690 = vrot.lane.b32.xlu1 %v689_v15, %s728_s22  ;;  %v350_v33 = vunpack.c.h.bf16 %v348_v25  ;;  %v694_v34 = vpack.i.bf16 %v286_v20, %v289_v23  ;;  %v329_v35 = vunpack.c.h.bf16 %v327_v16  ;;  %v332_v36 = vcombine.high %v328_v24, %v328_v24  ;;  %v370_v41 = vld [vmem:[%s777_s20] sm:$0x3f] }
  0x1a   : > { %680 = vrot.lane.b32.xlu0 %v679_v18, %s729_s23  ;;  %v212_v28 = vcombine.high %v209_v26, %v209_v26  ;;  %214 = vst [vmem:[#allocation2] sm:$0xf] %v209_v26  ;;  %217 = vst.msk [vmem:[#allocation2 + $0x10] sm:$0xf] %vm216_vm0, %v210_v27  ;;  %v699_v37 = vpack.i.bf16 %v311_v32, %v306_v31  ;;  %v349_v38 = vunpack.c.l.bf16 %v348_v25  ;;  %v371_v43 = vunpack.c.l.bf16 %v370_v41 }
  0x1b   : > { %v354_v39 = vcombine.low %v350_v33, %v350_v33  ;;  %v704_v40 = vpack.i.bf16 %v329_v35, %v332_v36  ;;  %v310_v44 = vcombine.low %v306_v31, %v306_v31  ;;  %v372_v48 = vunpack.c.h.bf16 %v370_v41 }
  0x1c   : > { %215 = vst [vmem:[#allocation2 + $0x8] sm:$0xf] %v212_v28  ;;  %v375_v45 = vcombine.high %v371_v43, %v371_v43  ;;  %v353_v46 = vcombine.low %v349_v38, %v349_v38 }
  0x1d   : > { %225 = vrot.lane.b32.xlu1 %v223_v19, %s729_s23  ;;  %v709_v42 = vpack.i.bf16 %v354_v39, %v349_v38 }
  0x1e   : > { %685 = vrot.lane.b32.xlu0 %v684_v22, %s727_s21  ;;  %v714_v47 = vpack.i.bf16 %v375_v45, %v371_v43 }
  0x21   : > { %269 = vrot.lane.b32.xlu1 %v267_v30, %s728_s22 }
  0x22   : > { %695 = vrot.lane.b32.xlu0 %v694_v34, %s731_s24 }
  0x25   : > { %700 = vrot.lane.b32.xlu1 %v699_v37, %s732_s25 }
  0x26   : > { %705 = vrot.lane.b32.xlu0 %v704_v40, %s733_s26 }
  0x29   : > { %710 = vrot.lane.b32.xlu1 %v709_v42, %s734_s27 }
  0x2a   : > { %290 = vrot.lane.b32.xlu0 %v285_v13, %s731_s24 }
  0x2d   : > { %312 = vrot.lane.b32.xlu1 %v310_v44, %s732_s25 }
  0x2e   : > { %333 = vrot.lane.b32.xlu0 %v328_v24, %s733_s26 }
  0x31   : > { %355 = vrot.lane.b32.xlu1 %v353_v46, %s734_s27 }
  0x32   : > { %715 = vrot.lane.b32.xlu0 %v714_v47, %s735_s28 }
  0x35   : > { %380 = vrot.lane.b32.xlu1 %v372_v48, %s735_s28 }
  0x86   : > { %v248_v50 = vpop.permute.xlu0 %247 }
  0x8b   : > { %v691_v51 = vpop.permute.xlu1 %690 }
  0x8c   : > { %v693_v52 = vunpack.i.h.bf16 %v691_v51  ;;  %v692_v53 = vunpack.i.l.bf16 %v691_v51  ;;  %v681_v54 = vpop.permute.xlu0 %680 }
  0x8d   : > { %v683_v55 = vunpack.i.h.bf16 %v681_v54  ;;  %v682_v56 = vunpack.i.l.bf16 %v681_v54 }
  0x8e   : > { %283 = vst.msk [vmem:[#allocation2 + $0x28] sm:$0xf0] %vm239_vm2, %v693_v52  ;;  %v277_v57 = vsel %vm275_vm3, %v692_v53, %v693_v52 }
  0x8f   : > { %240 = vst.msk [vmem:[#allocation2 + $0x10] sm:$0xf0] %vm239_vm2, %v683_v55  ;;  %v233_v58 = vsel %vm231_vm4, %v682_v56, %v683_v55  ;;  %v226_v59 = vpop.permute.xlu1 %225  ;;  %282 = vst [vmem:[#allocation2 + $0x20] sm:$0xf0] %v277_v57 }
  0x90   : > { %v686_v60 = vpop.permute.xlu0 %685  ;;  %238 = vst [vmem:[#allocation2 + $0x8] sm:$0xf0] %v233_v58  ;;  %v232_v61 = vsel %vm231_vm4, %v226_v59, %v682_v56 }
  0x91   : > { %v688_v62 = vunpack.i.h.bf16 %v686_v60  ;;  %v687_v63 = vunpack.i.l.bf16 %v686_v60  ;;  %237 = vst [vmem:[#allocation2] sm:$0xf0] %v232_v61  ;;  %v391_v61 = vld [vmem:[%s830_s1] sm:$0xf] }
  0x93   : > { %261 = vst.msk [vmem:[#allocation2 + $0x28] sm:$0xf] %vm216_vm0, %v688_v62  ;;  %v254_v0 = vsel %vm253_vm5, %v248_v50, %v687_v63  ;;  %v255_v1 = vsel %vm253_vm5, %v687_v63, %v688_v62  ;;  %v270_v2 = vpop.permute.xlu1 %269 }
  0x94   : > { %259 = vst [vmem:[#allocation2 + $0x18] sm:$0xf] %v254_v0  ;;  %260 = vst [vmem:[#allocation2 + $0x20] sm:$0xf] %v255_v1  ;;  %v696_v3 = vpop.permute.xlu0 %695  ;;  %v276_v4 = vsel %vm275_vm3, %v270_v2, %v692_v53  ;;  %v511_v0 = vld [vmem:[%s831_s2] sm:$0x7] }
  0x95   : > { %v698_v5 = vunpack.i.h.bf16 %v696_v3  ;;  %v697_v6 = vunpack.i.l.bf16 %v696_v3  ;;  %281 = vst [vmem:[#allocation2 + $0x18] sm:$0xf0] %v276_v4 }
  0x96   : > { %v394_v14 = vld [vmem:[#allocation2 + $0x10] sm:$0xff] }
  0x97   : > { %304 = vst.msk [vmem:[#allocation2 + $0x40] sm:$0xf] %vm216_vm0, %v698_v5  ;;  %v701_v7 = vpop.permute.xlu1 %700  ;;  %v298_v8 = vsel %vm296_vm6, %v697_v6, %v698_v5  ;;  %v393_v19 = vld [vmem:[#allocation2 + $0x8] sm:$0xff] }
  0x98   : > { %v706_v9 = vpop.permute.xlu0 %705  ;;  %v703_v10 = vunpack.i.h.bf16 %v701_v7  ;;  %v702_v11 = vunpack.i.l.bf16 %v701_v7  ;;  %303 = vst [vmem:[#allocation2 + $0x38] sm:$0xf] %v298_v8  ;;  %v392_v26 = vld [vmem:[#allocation2] sm:$0xff] }
  0x99   : > { %v708_v12 = vunpack.i.h.bf16 %v706_v9  ;;  %v707_v13 = vunpack.i.l.bf16 %v706_v9 }
  0x9a   : > { %326 = vst.msk [vmem:[#allocation2 + $0x40] sm:$0xf0] %vm239_vm2, %v703_v10  ;;  %v397_v15 = vld [vmem:[#allocation2 + $0x28] sm:$0xff]  ;;  %v320_v16 = vsel %vm318_vm7, %v702_v11, %v703_v10 }
  0x9b   : > { %347 = vst.msk [vmem:[#allocation2 + $0x58] sm:$0xf] %vm216_vm0, %v708_v12  ;;  %v711_v17 = vpop.permute.xlu1 %710  ;;  %v409_v18 = vpack.c.bf16 %v397_v15, %v394_v14  ;;  %v396_v20 = vld [vmem:[#allocation2 + $0x20] sm:$0xff]  ;;  %v341_v21 = vsel %vm339_vm8, %v707_v13, %v708_v12  ;;  %325 = vst [vmem:[#allocation2 + $0x38] sm:$0xf0] %v320_v16 }
  0x9c   : > { %v291_v22 = vpop.permute.xlu0 %290  ;;  %v713_v23 = vunpack.i.h.bf16 %v711_v17  ;;  %v712_v24 = vunpack.i.l.bf16 %v711_v17  ;;  %v408_v25 = vpack.c.bf16 %v396_v20, %v393_v19  ;;  %346 = vst [vmem:[#allocation2 + $0x50] sm:$0xf] %v341_v21  ;;  %v395_v27 = vld [vmem:[#allocation2 + $0x18] sm:$0xff] }
  0x9d   : > { %v297_v28 = vsel %vm296_vm6, %v291_v22, %v697_v6  ;;  %650 = vmatpush3.bf16.msra.mxu1 %v409_v18  ;;  %v407_v30 = vpack.c.bf16 %v395_v27, %v392_v26 }
  0x9e   : > { %302 = vst [vmem:[#allocation2 + $0x30] sm:$0xf] %v297_v28  ;;  %369 = vst.msk [vmem:[#allocation2 + $0x58] sm:$0xf0] %vm239_vm2, %v713_v23  ;;  %430 = vmatprep.subr.bf16.mxu0 %v408_v25  ;;  %v363_v31 = vsel %vm361_vm9, %v712_v24, %v713_v23  ;;  %651 = vmatprep.subr.bf16.mxu1 %v730_v29 }
  0x9f   : > { %v313_v32 = vpop.permute.xlu1 %312  ;;  %431 = vmatpush1.bf16.msra.mxu0 %v407_v30  ;;  %368 = vst [vmem:[#allocation2 + $0x50] sm:$0xf0] %v363_v31 }
  0xa0   : > { %v334_v33 = vpop.permute.xlu0 %333  ;;  %v319_v34 = vsel %vm318_vm7, %v313_v32, %v702_v11 }
  0xa1   : > { %v340_v35 = vsel %vm339_vm8, %v334_v33, %v707_v13  ;;  %324 = vst [vmem:[#allocation2 + $0x30] sm:$0xf0] %v319_v34  ;;  %v400_v41 = vld [vmem:[#allocation2 + $0x40] sm:$0xff] }
  0xa2   : > { %345 = vst [vmem:[#allocation2 + $0x48] sm:$0xf] %v340_v35  ;;  %v399_v44 = vld [vmem:[#allocation2 + $0x38] sm:$0xff] }
  0xa3   : > { %v356_v36 = vpop.permute.xlu1 %355 }
  0xa4   : > { %v362_v37 = vsel %vm361_vm9, %v356_v36, %v712_v24  ;;  %v716_v38 = vpop.permute.xlu0 %715 }
  0xa5   : > { %367 = vst [vmem:[#allocation2 + $0x48] sm:$0xf0] %v362_v37  ;;  %v718_v39 = vunpack.i.h.bf16 %v716_v38  ;;  %v717_v40 = vunpack.i.l.bf16 %v716_v38  ;;  %v403_v42 = vld [vmem:[#allocation2 + $0x58] sm:$0xff] }
  0xa6   : > { %v412_v43 = vpack.c.bf16 %v403_v42, %v400_v41  ;;  %v402_v45 = vld [vmem:[#allocation2 + $0x50] sm:$0xff] }
  0xa7   : > { %v383_v46 = vsel %vm382_vm10, %v717_v40, %v718_v39  ;;  %v381_v47 = vpop.permute.xlu1 %380  ;;  %v411_v48 = vpack.c.bf16 %v402_v45, %v399_v44 }
  0xa8   : > { %388 = vst [vmem:[#allocation2 + $0x60] sm:$0xf] %v383_v46  ;;  %v384_v49 = vsel %vm382_vm10, %v718_v39, %v381_v47  ;;  %390 = vst.msk [vmem:[#allocation2 + $0x70] sm:$0xf] %vm216_vm0, %v381_v47  ;;  %652 = vmatpush3.bf16.msra.mxu1 %v412_v43  ;;  %v398_v50 = vld [vmem:[#allocation2 + $0x30] sm:$0xff] }
  0xa9   : > { %389 = vst [vmem:[#allocation2 + $0x68] sm:$0xf] %v384_v49  ;;  %432 = vmatprep.subr.bf16.mxu0 %v411_v48  ;;  %653 = vmatprep.subr.bf16.mxu1 %v730_v29  ;;  %v513_v29 = vlaneseq }
  0xab   : > { %v514_v62 = vshrl.u32 %v513_v29, 7 }
  0xac   : > { %v401_v51 = vld [vmem:[#allocation2 + $0x48] sm:$0xff] }
  0xad   : > { %v410_v52 = vpack.c.bf16 %v401_v51, %v398_v50  ;;  %v523_v63 = vsub.s32 2, %v514_v62  ;;  %v515_v1 = vsub.s32 0, %v514_v62  ;;  %v519_v2 = vsub.s32 1, %v514_v62 }
  0xaf   : > { %433 = vmatpush1.bf16.msra.mxu0 %v410_v52  ;;  %v406_v53 = vld [vmem:[#allocation2 + $0x70] sm:$0xf]  ;;  %v404_v54 = vld [vmem:[#allocation2 + $0x60] sm:$0xf]  ;;  %v524_v3 = vrot.slane %v511_v0, %v523_v63  ;;  %v516_v4 = vrot.slane %v511_v0, %v515_v1  ;;  %v520_v5 = vrot.slane %v511_v0, %v519_v2 }
  0xb0   : > { %v405_v55 = vld [vmem:[#allocation2 + $0x68] sm:$0xf]  ;;  %v415_v56 = vpack.c.bf16 %v406_v53, %v406_v53  ;;  %v413_v57 = vpack.c.bf16 %v404_v54, %v404_v54 }
  0xb1   : > { %v414_v58 = vpack.c.bf16 %v405_v55, %v405_v55 }
  0xb2   : > { %v428_v59 = vsel %vm420_vm11, %v415_v56, 0  ;;  %v422_v60 = vsel %vm420_vm11, %v413_v57, 0 }
  0xb3   : > { %640 = vmatprep.subr.msk.bf16.mxu0 %vm420_vm11, %v414_v58  ;;  %654 = vmatpush3.bf16.msra.mxu1 %v428_v59 }
  0xb4   : > { %435 = vmatpush1.bf16.msra.mxu0 %v422_v60 }
  0xb6   : > { %656 = vmatmul.mubr.msk.bf16.vlgmr.msra.gmra.mrb[0].mxu1 %vm416_vm12, %v391_v61 }
  0xb7   : > { %641 = vmatmul.mubr.msk.bf16.vlgmr.msra.gmra.mrb[0].mxu0 %vm416_vm12, %v391_v61 }
 0x189   : > { %v505_v6 = vpop.f32.mrb[0].mxu1 }
 0x18a   : > { %v530_v7 = vmul.f32 %v524_v3, %v505_v6  ;;  %v464_v8 = vpop.f32.mrb[0].mxu0  ;;  %v657_v9 = vpop.f32.mrb[1].mxu1 }
 0x18b   : > { %v528_v10 = vmul.f32 %v516_v4, %v464_v8  ;;  %v466_v11 = vpop.f32.mrb[1].mxu0  ;;  %v508_v12 = vpop.f32.mrb[2].mxu1 }
 0x18c   : > { %v529_v13 = vmul.f32 %v520_v5, %v466_v11  ;;  %v468_v14 = vpop.f32.mrb[2].mxu0  ;;  %v658_v15 = vpop.f32.mrb[3].mxu1  ;;  %v541_v16 = vmul.f32 %v530_v7, %v505_v6  ;;  %v533_v19 = vsel %vm532_vm13, %v530_v7, 0.0 }
 0x18d   : > { %v539_v17 = vmul.f32 %v528_v10, %v464_v8  ;;  %v469_v18 = vpop.f32.mrb[3].mxu0 }
 0x18e   : > { %v540_v20 = vmul.f32 %v529_v13, %v466_v11  ;;  %v531_v21 = vadd.f32 %v529_v13, %v528_v10  ;;  %v543_v24 = vsel %vm532_vm13, %v541_v16, 0.0 }
 0x190   : > { %v534_v22 = vadd.f32 %v533_v19, %v531_v21  ;;  %v542_v23 = vadd.f32 %v540_v20, %v539_v17 }
 0x192   : > { %535 = vadd.xlane.f32.xlu0 %v534_v22  ;;  %v544_v25 = vadd.f32 %v543_v24, %v542_v23 }
 0x194   : > { %545 = vadd.xlane.f32.xlu1 %v544_v25 }
 0x21f   : > { %v536_v26 = vpop.xlane.xlu0 %535 }
 0x220   : > { %538 = vst.msk [vmem:[%s202_s10] sm:$0xff] %vm537_vm14, %v536_v26 }
 0x221   : > { %v546_v27 = vpop.xlane.xlu1 %545 }
 0x222   : > { %547 = vst.msk [vmem:[%s206_s13] sm:$0xff] %vm537_vm14, %v546_v27 }
 0x223 PF: > { %s15_s15 = sadd.s32 1, %s725_s15  }
 0x224   : > { %p12_p4 = scmp.ge.s32.totalorder %s15_s15, 4  }
 0x226   :  { %14 = sbr.rel (!%p12_p4) target bundleno = 1 (0x1), region = 74 }

</bundles_post_ra>
